<compile_context>
chip_gen: v7x
topology: tpu7x:2x2x1
jax: 0.10.0
libtpu: 0.0.40
codegen_flags: <defaults>
</compile_context>

<pallas_src>
import functools

import jax
import jax.numpy as jnp
from jax import lax
from jax.experimental import pallas as pl
from jax.experimental.pallas import tpu as pltpu


def _round_up(x, m):
    return ((x + m - 1) // m) * m


def _attention_branch_kernel(x_ref, m_ref, wf_ref, bf_ref, wa_ref, ba_ref,
                             wo_ref, bo_ref, pool_ref,
                             att_ref, pred_ref, slab_ref, *, W, L, Cpad):
    x = x_ref[...]                                    # (Cpad, L) f32

    # ---- im2col: 9 lane-rolled, boundary-masked copies into a VMEM slab.
    for tap in range(9):
        dh = tap // 3 - 1
        dw = tap % 3 - 1
        off = dh * W + dw                             # flat-spatial neighbor offset
        shifted = x if off == 0 else pltpu.roll(x, shift=(-off) % L, axis=1)
        slab_ref[pl.ds(tap * Cpad, Cpad), :] = shifted * m_ref[pl.ds(tap, 1), :]

    # ---- conv1(3x3) + conv2(1x1) folded: single matmul, K = 9*Cpad.
    x2 = jnp.dot(wf_ref[...], slab_ref[...],
                 preferred_element_type=jnp.float32) + bf_ref[...]
    x2r = jnp.maximum(x2, 0.0)                        # (A_pad, L)

    # ---- attention head: 1x1 conv + sigmoid (lane-dense output store).
    att_ref[0] = jax.nn.sigmoid(
        jnp.dot(wa_ref[...], x2r, preferred_element_type=jnp.float32) + ba_ref[...])

    # ---- prediction head: pool first (linear), then tiny 1x1 conv + sigmoid.
    pooled = jnp.dot(x2r, pool_ref[...],
                     preferred_element_type=jnp.float32)          # (A_pad, 128)
    pred_ref[0] = jax.nn.sigmoid(
        jnp.dot(wo_ref[...], pooled, preferred_element_type=jnp.float32) + bo_ref[...])


def attention_branch_forward(x, params, *, max_block_lanes=8192):
    """x: (B, Cin, H, W) f32 NCHW. Returns (attention (B,A,H,W), predict (B,A))."""
    B, Cin, H, W = x.shape
    A = params["w2"].shape[0]
    HW = H * W
    A_pad = _round_up(A, 8)
    Cpad = _round_up(Cin, 8)
    PB = 128  # lane-dense prediction width

    # Batch blocking: pack as many batches as reasonable into one grid step.
    bblk = max(1, min(B, max_block_lanes // max(HW, 1)))
    while B % bblk != 0:
        bblk -= 1
    if bblk < B and (bblk * HW) % 128 != 0:
        bblk = B          # fall back to a single full block (always legal)
    nblk = B // bblk
    L = bblk * HW
    assert bblk <= PB, "batch block must fit in the 128-lane pred output"
    # TODO(synk): at realistic feature-map sizes add a spatial (HW) grid axis
    # with halo handling so the per-step working set fits v7x's 64 MiB VMEM.

    f32 = jnp.float32
    hp = lax.Precision.HIGHEST

    # ---- glue: layouts + host-side weight folding (tiny, amortized over B*HW).
    x_cl = jnp.transpose(x.astype(f32), (1, 0, 2, 3)).reshape(Cin, B * HW)
    x_cl = jnp.pad(x_cl, ((0, Cpad - Cin), (0, 0)))              # (Cpad, B*HW)

    w1_t = jnp.transpose(params["w1"].astype(f32), (2, 3, 0, 1)).reshape(9, -1, Cin)
    wf = jnp.einsum("ao,toc->tac", params["w2"].astype(f32), w1_t, precision=hp)
    wf = jnp.pad(wf, ((0, 0), (0, A_pad - A), (0, Cpad - Cin)))
    w_fold = jnp.transpose(wf, (1, 0, 2)).reshape(A_pad, 9 * Cpad)
    b_fold = (jnp.einsum("ao,o->a", params["w2"].astype(f32),
                         params["b1"].astype(f32), precision=hp)
              + params["b2"].astype(f32))
    b_fold = jnp.pad(b_fold, (0, A_pad - A)).reshape(A_pad, 1)

    def pad_sq(wname, bname):
        wp = jnp.pad(params[wname].astype(f32), ((0, A_pad - A), (0, A_pad - A)))
        bp = jnp.pad(params[bname].astype(f32), (0, A_pad - A)).reshape(A_pad, 1)
        return wp, bp

    wa_p, ba_p = pad_sq("wa", "ba")
    wo_p, bo_p = pad_sq("wo", "bo")

    # 9 boundary masks (periodic per image, shared by all batch blocks).
    s = jnp.arange(L, dtype=jnp.int32) % HW
    hh = s // W
    ww = s % W
    masks = []
    for tap in range(9):
        dh = tap // 3 - 1
        dw = tap % 3 - 1
        ok = (hh + dh >= 0) & (hh + dh < H) & (ww + dw >= 0) & (ww + dw < W)
        masks.append(ok)
    masks = jnp.stack(masks, axis=0).astype(f32)                 # (9, L)

    # Pooling matrix: per-batch mean over HW lanes; columns >= bblk are zero.
    p_idx = jnp.arange(L, dtype=jnp.int32)[:, None] // HW
    c_idx = jnp.arange(PB, dtype=jnp.int32)[None, :]
    pool = jnp.where(p_idx == c_idx, 1.0 / HW, 0.0).astype(f32)  # (L, PB)

    kernel = functools.partial(_attention_branch_kernel, W=W, L=L, Cpad=Cpad)

    att_blk, pred_blk = pl.pallas_call(
        kernel,
        out_shape=(
            jax.ShapeDtypeStruct((nblk, A_pad, L), f32),
            jax.ShapeDtypeStruct((nblk, A_pad, PB), f32),
        ),
        grid_spec=pltpu.PrefetchScalarGridSpec(
            num_scalar_prefetch=0,
            grid=(nblk,),
            in_specs=[
                pl.BlockSpec((Cpad, L), lambda b: (0, b)),          # x
                pl.BlockSpec((9, L), lambda b: (0, 0)),             # boundary masks
                pl.BlockSpec((A_pad, 9 * Cpad), lambda b: (0, 0)),  # folded conv1+conv2 W
                pl.BlockSpec((A_pad, 1), lambda b: (0, 0)),         # folded bias
                pl.BlockSpec((A_pad, A_pad), lambda b: (0, 0)),     # w_att
                pl.BlockSpec((A_pad, 1), lambda b: (0, 0)),         # b_att
                pl.BlockSpec((A_pad, A_pad), lambda b: (0, 0)),     # w_out
                pl.BlockSpec((A_pad, 1), lambda b: (0, 0)),         # b_out
                pl.BlockSpec((L, PB), lambda b: (0, 0)),            # pooling matrix
            ],
            out_specs=[
                pl.BlockSpec((1, A_pad, L), lambda b: (b, 0, 0)),   # attention
                pl.BlockSpec((1, A_pad, PB), lambda b: (b, 0, 0)),  # prediction
            ],
            scratch_shapes=[pltpu.VMEM((9 * Cpad, L), f32)],        # im2col slab
        ),
        compiler_params=pltpu.CompilerParams(
            dimension_semantics=("parallel",),
            vmem_limit_bytes=32 * 1024 * 1024),
    )(x_cl, masks, w_fold, b_fold, wa_p, ba_p, wo_p, bo_p, pool)

    # Glue: unpack padded / batch-major-lane layouts back to NCHW.
    attention = att_blk.reshape(nblk, A_pad, bblk, H, W)
    attention = jnp.transpose(attention, (0, 2, 1, 3, 4)).reshape(B, A_pad, H, W)[:, :A]
    x_predict = jnp.transpose(pred_blk[:, :A, :bblk], (0, 2, 1)).reshape(B, A)
    return attention, x_predict


def reference_forward(x, p):
    """Pure-JAX reference matching the PyTorch module semantics."""
    hp = lax.Precision.HIGHEST
    x1 = lax.conv_general_dilated(
        x, p["w1"], window_strides=(1, 1), padding="SAME",
        dimension_numbers=("NCHW", "OIHW", "NCHW"),
        precision=hp) + p["b1"][None, :, None, None]
    x2 = jnp.einsum("oi,bihw->bohw", p["w2"], x1,
                    precision=hp) + p["b2"][None, :, None, None]
    x2r = jnp.maximum(x2, 0.0)
    att = jax.nn.sigmoid(jnp.einsum("oi,bihw->bohw", p["wa"], x2r, precision=hp)
                         + p["ba"][None, :, None, None])
    xo = jnp.einsum("oi,bihw->bohw", p["wo"], x2r,
                    precision=hp) + p["bo"][None, :, None, None]
    pred = jax.nn.sigmoid(jnp.mean(xo, axis=(2, 3)))
    return att, pred


def init_params(key, input_channel, output_channel, au_num):
    """Deterministic synthetic init (PyTorch-like uniform(-1/sqrt(fan_in), .))."""
    ks = jax.random.split(key, 8)

    def u(k, shape, fan_in):
        bound = 1.0 / (fan_in ** 0.5)
        return jax.random.uniform(k, shape, jnp.float32, -bound, bound)

    return {
        "w1": u(ks[0], (output_channel, input_channel, 3, 3), input_channel * 9),
        "b1": u(ks[1], (output_channel,), input_channel * 9),
        "w2": u(ks[2], (au_num, output_channel), output_channel),
        "b2": u(ks[3], (au_num,), output_channel),
        "wa": u(ks[4], (au_num, au_num), au_num),
        "ba": u(ks[5], (au_num,), au_num),
        "wo": u(ks[6], (au_num, au_num), au_num),
        "bo": u(ks[7], (au_num,), au_num),
    }


if __name__ == "__main__":
    B, Cin, Cout, A, H, W = 2, 4, 8, 12, 16, 16
    key = jax.random.PRNGKey(0)
    kx, kp = jax.random.split(key)
    x = jax.random.normal(kx, (B, Cin, H, W), jnp.float32)
    params = init_params(kp, Cin, Cout, A)

    attention, x_predict = attention_branch_forward(x, params)
    attention = jax.block_until_ready(attention)
    x_predict = jax.block_until_ready(x_predict)

    att_ref, pred_ref = reference_forward(x, params)
    assert attention.shape == (B, A, H, W) and x_predict.shape == (B, A)
    assert float(jnp.max(jnp.abs(attention - att_ref))) < 2e-4
    assert float(jnp.max(jnp.abs(x_predict - pred_ref))) < 2e-4

    print("KERNEL_OK")
</pallas_src>

<mosaic_0001>
module attributes {stable_mosaic.version = 11 : i64} {
  func.func @_attention_branch_kernel(%arg0: i32, %arg1: memref<8x512xf32, #tpu.memory_space<vmem>>, %arg2: memref<9x512xf32, #tpu.memory_space<vmem>>, %arg3: memref<16x72xf32, #tpu.memory_space<vmem>>, %arg4: memref<16x1xf32, #tpu.memory_space<vmem>>, %arg5: memref<16x16xf32, #tpu.memory_space<vmem>>, %arg6: memref<16x1xf32, #tpu.memory_space<vmem>>, %arg7: memref<16x16xf32, #tpu.memory_space<vmem>>, %arg8: memref<16x1xf32, #tpu.memory_space<vmem>>, %arg9: memref<512x128xf32, #tpu.memory_space<vmem>>, %arg10: memref<1x16x512xf32, #tpu.memory_space<vmem>>, %arg11: memref<1x16x128xf32, #tpu.memory_space<vmem>>, %arg12: memref<72x512xf32, #tpu.memory_space<vmem>>) attributes {dimension_semantics = [#tpu.dimension_semantics<parallel>], iteration_bounds = array<i64: 1>, scalar_prefetch = 0 : i64, scratch_operands = 1 : i64, tpu.core_type = #tpu.core_type<tc>, window_params = [{transform_indices = @transform_0, window_bounds = array<i64: 8, 512>}, {pipeline_mode = #tpu.pipeline_mode<synchronous>, transform_indices = @transform_1, window_bounds = array<i64: 9, 512>}, {pipeline_mode = #tpu.pipeline_mode<synchronous>, transform_indices = @transform_2, window_bounds = array<i64: 16, 72>}, {pipeline_mode = #tpu.pipeline_mode<synchronous>, transform_indices = @transform_3, window_bounds = array<i64: 16, 1>}, {pipeline_mode = #tpu.pipeline_mode<synchronous>, transform_indices = @transform_4, window_bounds = array<i64: 16, 16>}, {pipeline_mode = #tpu.pipeline_mode<synchronous>, transform_indices = @transform_5, window_bounds = array<i64: 16, 1>}, {pipeline_mode = #tpu.pipeline_mode<synchronous>, transform_indices = @transform_6, window_bounds = array<i64: 16, 16>}, {pipeline_mode = #tpu.pipeline_mode<synchronous>, transform_indices = @transform_7, window_bounds = array<i64: 16, 1>}, {pipeline_mode = #tpu.pipeline_mode<synchronous>, transform_indices = @transform_8, window_bounds = array<i64: 512, 128>}, {transform_indices = @transform_9, window_bounds = array<i64: 1, 16, 512>}, {transform_indices = @transform_10, window_bounds = array<i64: 1, 16, 128>}]} {
    %c0 = arith.constant 0 : index
    %c0_0 = arith.constant 0 : index
    %0 = vector.load %arg1[%c0, %c0_0] : memref<8x512xf32, #tpu.memory_space<vmem>>, vector<8x512xf32>
    %c17_i32 = arith.constant 17 : i32
    %1 = tpu.dynamic_rotate %0 by %c17_i32 dim 1 : vector<8x512xf32>, i32 -> vector<8x512xf32>
    %c0_1 = arith.constant 0 : index
    %c0_2 = arith.constant 0 : index
    %2 = vector.load %arg2[%c0_1, %c0_2] : memref<9x512xf32, #tpu.memory_space<vmem>>, vector<1x512xf32>
    %3 = vector.broadcast %2 : vector<1x512xf32> to vector<8x512xf32>
    %4 = arith.mulf %1, %3 : vector<8x512xf32>
    %c0_3 = arith.constant 0 : index
    %c0_4 = arith.constant 0 : index
    %5 = vector.load %arg12[%c0_3, %c0_4] : memref<72x512xf32, #tpu.memory_space<vmem>>, vector<8x512xf32>
    tpu.vector_store %arg12[%c0_3, %c0_4], %4 {strides = array<i32>} : memref<72x512xf32, #tpu.memory_space<vmem>>, vector<8x512xf32>,
    %c16_i32 = arith.constant 16 : i32
    %6 = tpu.dynamic_rotate %0 by %c16_i32 dim 1 : vector<8x512xf32>, i32 -> vector<8x512xf32>
    %c1 = arith.constant 1 : index
    %c0_5 = arith.constant 0 : index
    %7 = vector.load %arg2[%c1, %c0_5] : memref<9x512xf32, #tpu.memory_space<vmem>>, vector<1x512xf32>
    %8 = vector.broadcast %7 : vector<1x512xf32> to vector<8x512xf32>
    %9 = arith.mulf %6, %8 : vector<8x512xf32>
    %c8 = arith.constant 8 : index
    %c0_6 = arith.constant 0 : index
    %10 = vector.load %arg12[%c8, %c0_6] : memref<72x512xf32, #tpu.memory_space<vmem>>, vector<8x512xf32>
    tpu.vector_store %arg12[%c8, %c0_6], %9 {strides = array<i32>} : memref<72x512xf32, #tpu.memory_space<vmem>>, vector<8x512xf32>,
    %c15_i32 = arith.constant 15 : i32
    %11 = tpu.dynamic_rotate %0 by %c15_i32 dim 1 : vector<8x512xf32>, i32 -> vector<8x512xf32>
    %c2 = arith.constant 2 : index
    %c0_7 = arith.constant 0 : index
    %12 = vector.load %arg2[%c2, %c0_7] : memref<9x512xf32, #tpu.memory_space<vmem>>, vector<1x512xf32>
    %13 = vector.broadcast %12 : vector<1x512xf32> to vector<8x512xf32>
    %14 = arith.mulf %11, %13 : vector<8x512xf32>
    %c16 = arith.constant 16 : index
    %c0_8 = arith.constant 0 : index
    %15 = vector.load %arg12[%c16, %c0_8] : memref<72x512xf32, #tpu.memory_space<vmem>>, vector<8x512xf32>
    tpu.vector_store %arg12[%c16, %c0_8], %14 {strides = array<i32>} : memref<72x512xf32, #tpu.memory_space<vmem>>, vector<8x512xf32>,
    %c1_i32 = arith.constant 1 : i32
    %16 = tpu.dynamic_rotate %0 by %c1_i32 dim 1 : vector<8x512xf32>, i32 -> vector<8x512xf32>
    %c3 = arith.constant 3 : index
    %c0_9 = arith.constant 0 : index
    %17 = vector.load %arg2[%c3, %c0_9] : memref<9x512xf32, #tpu.memory_space<vmem>>, vector<1x512xf32>
    %18 = vector.broadcast %17 : vector<1x512xf32> to vector<8x512xf32>
    %19 = arith.mulf %16, %18 : vector<8x512xf32>
    %c24 = arith.constant 24 : index
    %c0_10 = arith.constant 0 : index
    %20 = vector.load %arg12[%c24, %c0_10] : memref<72x512xf32, #tpu.memory_space<vmem>>, vector<8x512xf32>
    tpu.vector_store %arg12[%c24, %c0_10], %19 {strides = array<i32>} : memref<72x512xf32, #tpu.memory_space<vmem>>, vector<8x512xf32>,
    %c4 = arith.constant 4 : index
    %c0_11 = arith.constant 0 : index
    %21 = vector.load %arg2[%c4, %c0_11] : memref<9x512xf32, #tpu.memory_space<vmem>>, vector<1x512xf32>
    %22 = vector.broadcast %21 : vector<1x512xf32> to vector<8x512xf32>
    %23 = arith.mulf %0, %22 : vector<8x512xf32>
    %c32 = arith.constant 32 : index
    %c0_12 = arith.constant 0 : index
    %24 = vector.load %arg12[%c32, %c0_12] : memref<72x512xf32, #tpu.memory_space<vmem>>, vector<8x512xf32>
    tpu.vector_store %arg12[%c32, %c0_12], %23 {strides = array<i32>} : memref<72x512xf32, #tpu.memory_space<vmem>>, vector<8x512xf32>,
    %c511_i32 = arith.constant 511 : i32
    %25 = tpu.dynamic_rotate %0 by %c511_i32 dim 1 : vector<8x512xf32>, i32 -> vector<8x512xf32>
    %c5 = arith.constant 5 : index
    %c0_13 = arith.constant 0 : index
    %26 = vector.load %arg2[%c5, %c0_13] : memref<9x512xf32, #tpu.memory_space<vmem>>, vector<1x512xf32>
    %27 = vector.broadcast %26 : vector<1x512xf32> to vector<8x512xf32>
    %28 = arith.mulf %25, %27 : vector<8x512xf32>
    %c40 = arith.constant 40 : index
    %c0_14 = arith.constant 0 : index
    %29 = vector.load %arg12[%c40, %c0_14] : memref<72x512xf32, #tpu.memory_space<vmem>>, vector<8x512xf32>
    tpu.vector_store %arg12[%c40, %c0_14], %28 {strides = array<i32>} : memref<72x512xf32, #tpu.memory_space<vmem>>, vector<8x512xf32>,
    %c497_i32 = arith.constant 497 : i32
    %30 = tpu.dynamic_rotate %0 by %c497_i32 dim 1 : vector<8x512xf32>, i32 -> vector<8x512xf32>
    %c6 = arith.constant 6 : index
    %c0_15 = arith.constant 0 : index
    %31 = vector.load %arg2[%c6, %c0_15] : memref<9x512xf32, #tpu.memory_space<vmem>>, vector<1x512xf32>
    %32 = vector.broadcast %31 : vector<1x512xf32> to vector<8x512xf32>
    %33 = arith.mulf %30, %32 : vector<8x512xf32>
    %c48 = arith.constant 48 : index
    %c0_16 = arith.constant 0 : index
    %34 = vector.load %arg12[%c48, %c0_16] : memref<72x512xf32, #tpu.memory_space<vmem>>, vector<8x512xf32>
    tpu.vector_store %arg12[%c48, %c0_16], %33 {strides = array<i32>} : memref<72x512xf32, #tpu.memory_space<vmem>>, vector<8x512xf32>,
    %c496_i32 = arith.constant 496 : i32
    %35 = tpu.dynamic_rotate %0 by %c496_i32 dim 1 : vector<8x512xf32>, i32 -> vector<8x512xf32>
    %c7 = arith.constant 7 : index
    %c0_17 = arith.constant 0 : index
    %36 = vector.load %arg2[%c7, %c0_17] : memref<9x512xf32, #tpu.memory_space<vmem>>, vector<1x512xf32>
    %37 = vector.broadcast %36 : vector<1x512xf32> to vector<8x512xf32>
    %38 = arith.mulf %35, %37 : vector<8x512xf32>
    %c56 = arith.constant 56 : index
    %c0_18 = arith.constant 0 : index
    %39 = vector.load %arg12[%c56, %c0_18] : memref<72x512xf32, #tpu.memory_space<vmem>>, vector<8x512xf32>
    tpu.vector_store %arg12[%c56, %c0_18], %38 {strides = array<i32>} : memref<72x512xf32, #tpu.memory_space<vmem>>, vector<8x512xf32>,
    %c495_i32 = arith.constant 495 : i32
    %40 = tpu.dynamic_rotate %0 by %c495_i32 dim 1 : vector<8x512xf32>, i32 -> vector<8x512xf32>
    %c8_19 = arith.constant 8 : index
    %c0_20 = arith.constant 0 : index
    %41 = vector.load %arg2[%c8_19, %c0_20] : memref<9x512xf32, #tpu.memory_space<vmem>>, vector<1x512xf32>
    %42 = vector.broadcast %41 : vector<1x512xf32> to vector<8x512xf32>
    %43 = arith.mulf %40, %42 : vector<8x512xf32>
    %c64 = arith.constant 64 : index
    %c0_21 = arith.constant 0 : index
    %44 = vector.load %arg12[%c64, %c0_21] : memref<72x512xf32, #tpu.memory_space<vmem>>, vector<8x512xf32>
    tpu.vector_store %arg12[%c64, %c0_21], %43 {strides = array<i32>} : memref<72x512xf32, #tpu.memory_space<vmem>>, vector<8x512xf32>,
    %c0_22 = arith.constant 0 : index
    %c0_23 = arith.constant 0 : index
    %45 = vector.load %arg3[%c0_22, %c0_23] : memref<16x72xf32, #tpu.memory_space<vmem>>, vector<16x72xf32>
    %c0_24 = arith.constant 0 : index
    %c0_25 = arith.constant 0 : index
    %46 = vector.load %arg12[%c0_24, %c0_25] : memref<72x512xf32, #tpu.memory_space<vmem>>, vector<72x512xf32>
    %cst = arith.constant dense<0.000000e+00> : vector<16x512xf32>
    %47 = tpu.matmul %45, %46, %cst {dimension_numbers = #tpu.dot_dimension_numbers<[1], [0], [0], [1], [0, 0, 1, 1], [], []>} : vector<16x72xf32>, vector<72x512xf32>, vector<16x512xf32> -> vector<16x512xf32>
    %c0_26 = arith.constant 0 : index
    %c0_27 = arith.constant 0 : index
    %48 = vector.load %arg4[%c0_26, %c0_27] : memref<16x1xf32, #tpu.memory_space<vmem>>, vector<16x1xf32>
    %49 = vector.broadcast %48 : vector<16x1xf32> to vector<16x512xf32>
    %50 = arith.addf %47, %49 : vector<16x512xf32>
    %cst_28 = arith.constant 0.000000e+00 : f32
    %51 = vector.broadcast %cst_28 : f32 to vector<16x512xf32>
    %52 = arith.maximumf %50, %51 : vector<16x512xf32>
    %c0_29 = arith.constant 0 : index
    %c0_30 = arith.constant 0 : index
    %53 = vector.load %arg5[%c0_29, %c0_30] : memref<16x16xf32, #tpu.memory_space<vmem>>, vector<16x16xf32>
    %cst_31 = arith.constant dense<0.000000e+00> : vector<16x512xf32>
    %54 = tpu.matmul %53, %52, %cst_31 {dimension_numbers = #tpu.dot_dimension_numbers<[1], [0], [0], [1], [0, 0, 1, 1], [], []>} : vector<16x16xf32>, vector<16x512xf32>, vector<16x512xf32> -> vector<16x512xf32>
    %c0_32 = arith.constant 0 : index
    %c0_33 = arith.constant 0 : index
    %55 = vector.load %arg6[%c0_32, %c0_33] : memref<16x1xf32, #tpu.memory_space<vmem>>, vector<16x1xf32>
    %56 = vector.broadcast %55 : vector<16x1xf32> to vector<16x512xf32>
    %57 = arith.addf %54, %56 : vector<16x512xf32>
    %58 = arith.negf %57 : vector<16x512xf32>
    %59 = math.exp %58 : vector<16x512xf32>
    %cst_34 = arith.constant 1.000000e+00 : f32
    %60 = vector.broadcast %cst_34 : f32 to vector<16x512xf32>
    %61 = arith.addf %60, %59 : vector<16x512xf32>
    %62 = arith.divf %60, %61 : vector<16x512xf32>
    %c0_35 = arith.constant 0 : index
    %c0_36 = arith.constant 0 : index
    %c0_37 = arith.constant 0 : index
    %63 = vector.load %arg10[%c0_35, %c0_36, %c0_37] : memref<1x16x512xf32, #tpu.memory_space<vmem>>, vector<1x16x512xf32>
    %64 = vector.shape_cast %63 : vector<1x16x512xf32> to vector<16x512xf32>
    %65 = vector.shape_cast %62 : vector<16x512xf32> to vector<1x16x512xf32>
    tpu.vector_store %arg10[%c0_35, %c0_36, %c0_37], %65 {strides = array<i32>} : memref<1x16x512xf32, #tpu.memory_space<vmem>>, vector<1x16x512xf32>,
    %c0_38 = arith.constant 0 : index
    %c0_39 = arith.constant 0 : index
    %66 = vector.load %arg9[%c0_38, %c0_39] : memref<512x128xf32, #tpu.memory_space<vmem>>, vector<512x128xf32>
    %cst_40 = arith.constant dense<0.000000e+00> : vector<16x128xf32>
    %67 = tpu.matmul %52, %66, %cst_40 {dimension_numbers = #tpu.dot_dimension_numbers<[1], [0], [0], [1], [0, 0, 1, 1], [], []>} : vector<16x512xf32>, vector<512x128xf32>, vector<16x128xf32> -> vector<16x128xf32>
    %c0_41 = arith.constant 0 : index
    %c0_42 = arith.constant 0 : index
    %68 = vector.load %arg7[%c0_41, %c0_42] : memref<16x16xf32, #tpu.memory_space<vmem>>, vector<16x16xf32>
    %cst_43 = arith.constant dense<0.000000e+00> : vector<16x128xf32>
    %69 = tpu.matmul %68, %67, %cst_43 {dimension_numbers = #tpu.dot_dimension_numbers<[1], [0], [0], [1], [0, 0, 1, 1], [], []>} : vector<16x16xf32>, vector<16x128xf32>, vector<16x128xf32> -> vector<16x128xf32>
    %c0_44 = arith.constant 0 : index
    %c0_45 = arith.constant 0 : index
    %70 = vector.load %arg8[%c0_44, %c0_45] : memref<16x1xf32, #tpu.memory_space<vmem>>, vector<16x1xf32>
    %71 = vector.broadcast %70 : vector<16x1xf32> to vector<16x128xf32>
    %72 = arith.addf %69, %71 : vector<16x128xf32>
    %73 = arith.negf %72 : vector<16x128xf32>
    %74 = math.exp %73 : vector<16x128xf32>
    %cst_46 = arith.constant 1.000000e+00 : f32
    %75 = vector.broadcast %cst_46 : f32 to vector<16x128xf32>
    %76 = arith.addf %75, %74 : vector<16x128xf32>
    %77 = arith.divf %75, %76 : vector<16x128xf32>
    %c0_47 = arith.constant 0 : index
    %c0_48 = arith.constant 0 : index
    %c0_49 = arith.constant 0 : index
    %78 = vector.load %arg11[%c0_47, %c0_48, %c0_49] : memref<1x16x128xf32, #tpu.memory_space<vmem>>, vector<1x16x128xf32>
    %79 = vector.shape_cast %78 : vector<1x16x128xf32> to vector<16x128xf32>
    %80 = vector.shape_cast %77 : vector<16x128xf32> to vector<1x16x128xf32>
    tpu.vector_store %arg11[%c0_47, %c0_48, %c0_49], %80 {strides = array<i32>} : memref<1x16x128xf32, #tpu.memory_space<vmem>>, vector<1x16x128xf32>,
    return
  }
  func.func @transform_0(%arg0: i32) -> (i32, i32) {
    %c0_i32 = arith.constant 0 : i32
    %c0_i32_0 = arith.constant 0 : i32
    return %c0_i32, %arg0 : i32, i32
  }
  func.func @transform_1(%arg0: i32) -> (i32, i32) {
    %c0_i32 = arith.constant 0 : i32
    %c0_i32_0 = arith.constant 0 : i32
    %c0_i32_1 = arith.constant 0 : i32
    return %c0_i32, %c0_i32_0 : i32, i32
  }
  func.func @transform_2(%arg0: i32) -> (i32, i32) {
    %c0_i32 = arith.constant 0 : i32
    %c0_i32_0 = arith.constant 0 : i32
    %c0_i32_1 = arith.constant 0 : i32
    return %c0_i32, %c0_i32_0 : i32, i32
  }
  func.func @transform_3(%arg0: i32) -> (i32, i32) {
    %c0_i32 = arith.constant 0 : i32
    %c0_i32_0 = arith.constant 0 : i32
    %c0_i32_1 = arith.constant 0 : i32
    return %c0_i32, %c0_i32_0 : i32, i32
  }
  func.func @transform_4(%arg0: i32) -> (i32, i32) {
    %c0_i32 = arith.constant 0 : i32
    %c0_i32_0 = arith.constant 0 : i32
    %c0_i32_1 = arith.constant 0 : i32
    return %c0_i32, %c0_i32_0 : i32, i32
  }
  func.func @transform_5(%arg0: i32) -> (i32, i32) {
    %c0_i32 = arith.constant 0 : i32
    %c0_i32_0 = arith.constant 0 : i32
    %c0_i32_1 = arith.constant 0 : i32
    return %c0_i32, %c0_i32_0 : i32, i32
  }
  func.func @transform_6(%arg0: i32) -> (i32, i32) {
    %c0_i32 = arith.constant 0 : i32
    %c0_i32_0 = arith.constant 0 : i32
    %c0_i32_1 = arith.constant 0 : i32
    return %c0_i32, %c0_i32_0 : i32, i32
  }
  func.func @transform_7(%arg0: i32) -> (i32, i32) {
    %c0_i32 = arith.constant 0 : i32
    %c0_i32_0 = arith.constant 0 : i32
    %c0_i32_1 = arith.constant 0 : i32
    return %c0_i32, %c0_i32_0 : i32, i32
  }
  func.func @transform_8(%arg0: i32) -> (i32, i32) {
    %c0_i32 = arith.constant 0 : i32
    %c0_i32_0 = arith.constant 0 : i32
    %c0_i32_1 = arith.constant 0 : i32
    return %c0_i32, %c0_i32_0 : i32, i32
  }
  func.func @transform_9(%arg0: i32) -> (i32, i32, i32) {
    %c0_i32 = arith.constant 0 : i32
    %c0_i32_0 = arith.constant 0 : i32
    %c0_i32_1 = arith.constant 0 : i32
    return %arg0, %c0_i32, %c0_i32_0 : i32, i32, i32
  }
  func.func @transform_10(%arg0: i32) -> (i32, i32, i32) {
    %c0_i32 = arith.constant 0 : i32
    %c0_i32_0 = arith.constant 0 : i32
    %c0_i32_1 = arith.constant 0 : i32
    return %arg0, %c0_i32, %c0_i32_0 : i32, i32, i32
  }
}

</mosaic_0001>

<bundles_post_ra>
// kernel: tpu_custom_call.1
= control target key start
LH: loop header
LB: loop body
LE: loop exit
PB: predicated region body
PF: predicated region fallthrough
CT: control target
= control target key end

     0   :  { %16 = vsyncpa [#allocation4], 0  ;;  %s2069_s0 = inlined_call_operand.vmem [shape: f32[8,512], index: 0, kind: input, shape index: {}]   ;;  %s2070_s1 = inlined_call_operand.hbm [shape: f32[9,512], index: 1, kind: input, shape index: {}]   ;;  %s2071_s2 = inlined_call_operand.vmem [shape: f32[16,72], index: 2, kind: input, shape index: {}]   ;;  %s2072_s3 = inlined_call_operand.vmem [shape: f32[16,1], index: 3, kind: input, shape index: {}]   ;;  %s2073_s4 = inlined_call_operand.vmem [shape: f32[16,16], index: 4, kind: input, shape index: {}]   ;;  %s2074_s5 = inlined_call_operand.vmem [shape: f32[16,1], index: 5, kind: input, shape index: {}]   ;;  %s2075_s6 = inlined_call_operand.hbm [shape: f32[16,16], index: 6, kind: input, shape index: {}]   ;;  %s2076_s7 = inlined_call_operand.vmem [shape: f32[16,1], index: 7, kind: input, shape index: {}]   ;;  %s2077_s8 = inlined_call_operand.hbm [shape: f32[512,128], index: 8, kind: input, shape index: {}]   ;;  %s2078_s9 = inlined_call_operand.hbm [shape: f32[1,16,512], index: 9, kind: output, shape index: {0}]   ;;  %s2079_s10 = inlined_call_operand.hbm [shape: f32[1,16,128], index: 10, kind: output, shape index: {1}]  }
   0x1   :  { %17 = vsyncpa [#allocation7], 0 }
   0x2   :  { %18 = vsyncpa [#allocation5], 0 }
   0x3   :  { %19 = vsyncpa [#allocation11], 0  ;;  %s1666_s13 = smov [#allocation6]   ;;  %s1548_s17 = scalar_lea.hbm %s2075_s6, 256 }
   0x4   :  { %s47_s14 = sshll.u32 %s1666_s13, 4  ;;  %p1549_p0 = scmp.ne.s32.totalorder %s2075_s6, %s1548_s17  ;;  %s48_s14 = int_to_ptr.vmem [resolvable:$true] %s47_s14 }
   0x5   :  { %p1552_p1 = scmp.lt.u32.totalorder %s1548_s17, %s2075_s6 }
   0x7   :  { %p1554_p2 = pnand %p1552_p1, %p1549_p0 }
   0x9   :  { %1557 = shalt.err (!%p1554_p2)
}
   0xa   :  { %s1558_s22 = scalar_lea.vmem %s48_s14, 256  ;;  %p1563_p4 = scmp.lt.s32.totalorder %s48_s14, %s48_s14 }
   0xb   :  { %p1559_p3 = scmp.ne.s32.totalorder %s48_s14, %s1558_s22  ;;  %p1564_p5 = scmp.lt.s32.totalorder %s1558_s22, %s1558_s22 }
   0xd   :  { %p1565_p6 = por %p1564_p5, %p1563_p4 }
   0xf   :  { %p1566_p7 = pnand %p1565_p6, %p1559_p3 }
  0x11   :  { %1569 = shalt.err (!%p1566_p7)
}
  0x12   :  { %s1667_s23 = smov 128   ;;  %s1668_s24 = smov 8  }
  0x13   :  { %53 = dma.hbm_to_vmem [thread:$0]  %s2075_s6, 256, %s48_s14, [#allocation7], %s1667_s23, %s1667_s23, %s1668_s24  }
  0x14   :  { %s1669_s27 = smov [#allocation3]   ;;  %s1570_s11 = scalar_lea.hbm %s2070_s1, 1024 }
  0x15   :  { %s27_s28 = sshll.u32 %s1669_s27, 4  ;;  %p1571_p8 = scmp.ne.s32.totalorder %s2070_s1, %s1570_s11  ;;  %s28_s28 = int_to_ptr.vmem [resolvable:$true] %s27_s28 }
  0x16   :  { %p1574_p9 = scmp.lt.u32.totalorder %s1570_s11, %s2070_s1 }
  0x18   :  { %p1576_p10 = pnand %p1574_p9, %p1571_p8 }
  0x1a   :  { %1579 = shalt.err (!%p1576_p10)
}
  0x1b   :  { %s1580_s17 = scalar_lea.vmem %s28_s28, 1024  ;;  %p1585_p12 = scmp.lt.s32.totalorder %s28_s28, %s28_s28 }
  0x1c   :  { %p1581_p11 = scmp.ne.s32.totalorder %s28_s28, %s1580_s17  ;;  %p1586_p13 = scmp.lt.s32.totalorder %s1580_s17, %s1580_s17 }
  0x1e   :  { %p1587_p0 = por %p1586_p13, %p1585_p12 }
  0x20   :  { %p1588_p1 = pnand %p1587_p0, %p1581_p11 }
  0x22   :  { %1591 = shalt.err (!%p1588_p1)
}
  0x23   :  { %s1670_s6 = smov 512   ;;  %s1671_s14 = smov 32  }
  0x24   :  { %33 = dma.hbm_to_vmem [thread:$0]  %s2070_s1, 1024, %s28_s28, [#allocation4], %s1670_s6, %s1670_s6, %s1671_s14  }
  0x25   :  { %s1672_s20 = smov [#allocation8]   ;;  %s1592_s26 = scalar_lea.hbm %s2077_s8, 8192 }
  0x26   :  { %s61_s21 = sshll.u32 %s1672_s20, 4  ;;  %p1593_p2 = scmp.ne.s32.totalorder %s2077_s8, %s1592_s26  ;;  %s62_s21 = int_to_ptr.vmem [resolvable:$true] %s61_s21 }
  0x27   :  { %p1596_p3 = scmp.lt.u32.totalorder %s1592_s26, %s2077_s8 }
  0x29   :  { %p1598_p4 = pnand %p1596_p3, %p1593_p2 }
  0x2b   :  { %1601 = shalt.err (!%p1598_p4)
}
  0x2c   :  { %s1602_s12 = scalar_lea.vmem %s62_s21, 8192  ;;  %p1607_p6 = scmp.lt.s32.totalorder %s62_s21, %s62_s21 }
  0x2d   :  { %p1603_p5 = scmp.ne.s32.totalorder %s62_s21, %s1602_s12  ;;  %p1608_p7 = scmp.lt.s32.totalorder %s1602_s12, %s1602_s12 }
  0x2f   :  { %p1609_p8 = por %p1608_p7, %p1607_p6 }
  0x31   :  { %p1610_p9 = pnand %p1609_p8, %p1603_p5 }
  0x33   :  { %1613 = shalt.err (!%p1610_p9)
}
  0x34   :  { %67 = dma.hbm_to_vmem [thread:$0]  %s2077_s8, 8192, %s62_s21, [#allocation7], %s1667_s23, %s1667_s23, %s1668_s24  }
  0x35   :  { %1658 = dma.done.wait [#allocation4], 1024  }
  0x36   :  { %1659 = vsyncadd [#allocation4], 4294966272 }
  0x37   :  { %1660 = dma.done.wait [#allocation7], 8448  }
  0x38   :  { %1661 = vsyncadd [#allocation7], 4294958848  ;;  %v1788_v0 = vld [vmem:[%s2069_s0 + $0x10] sm:$0xff]  ;;  %v1793_v1 = vld [vmem:[%s2069_s0] sm:$0xff]  ;;  %s1673_s18 = smov 17   ;;  %s1674_s22 = smov 16   ;;  %v89_v12 = vlaneseq }
  0x39   :  { %85 = vrot.lane.b32.xlu1 %v1788_v0, %s1673_s18  ;;  %81 = vrot.lane.b32.xlu0 %v1793_v1, %s1673_s18  ;;  %v1800_v2 = vld [vmem:[%s2069_s0 + $0x18] sm:$0xff]  ;;  %v1805_v3 = vld [vmem:[%s2069_s0 + $0x8] sm:$0xff]  ;;  %s1675_s25 = smov 15   ;;  %s1676_s0 = smov 1   ;;  %v1680_v4 = vmov 0.0   ;;  %v1682_v5 = vmov 0  }
  0x3a   :  { %s1677_s26 = smov 127   ;;  %s1678_s27 = smov 113   ;;  %586 = vmatprep.mubr.f32.mxu0 %v1680_v4  ;;  %663 = vmatprep.mubr.f32.mxu1 %v1680_v4  ;;  %v504_v6 = vld [vmem:[%s2072_s3 + $0x8] sm:$0xff]  ;;  %v503_v7 = vld [vmem:[%s2072_s3] sm:$0xff]  ;;  %v99_v13 = vshrl.u32 %v89_v12, 7  ;;  %v1857_v16 = vand.u32 127, %v89_v12 }
  0x3b   :  { %s1679_s29 = smov 112   ;;  %s1681_s30 = smov 111   ;;  %1507 = vset.pattern.permute.xlu1 %v1682_v5  ;;  %1506 = vset.pattern.permute.xlu0 %v1682_v5  ;;  %v686_v8 = vld [vmem:[%s2074_s5] sm:$0xff]  ;;  %v687_v9 = vld [vmem:[%s2074_s5 + $0x8] sm:$0xff]  ;;  %vm515_vm8 = vcmask 588800   ;;  %vm698_vm9 = vcmask 130048  }
  0x3c   :  { %v1131_v10 = vld [vmem:[%s2076_s7] sm:$0xff]  ;;  %v1132_v11 = vld [vmem:[%s2076_s7 + $0x8] sm:$0xff]  ;;  %v1859_v17 = vsub.s32 1, %v99_v13  ;;  %vm91_vm0 = vcmp.lt.s32.totalorder %v1857_v16, 17  ;;  %v1862_v20 = vsub.s32 0, %v99_v13  ;;  %v1864_v22 = vsub.s32 2, %v99_v13 }
  0x3d   :  { %87 = vrot.lane.b32.xlu1 %v1800_v2, %s1673_s18  ;;  %83 = vrot.lane.b32.xlu0 %v1805_v3, %s1673_s18  ;;  %v96_v18 = vld [vmem:[#allocation3] ss:$8 sm:$0xf]  ;;  %v140_v19 = vld [vmem:[#allocation3 + $0x1] ss:$8 sm:$0xf] }
  0x3e   :  { %v1866_v24 = vsub.s32 3, %v99_v13  ;;  %vm134_vm1 = vcmp.lt.s32.totalorder %v1857_v16, 16  ;;  %v105_v25 = vrot.slane %v96_v18, %v1859_v17  ;;  %v149_v26 = vrot.slane %v140_v19, %v1859_v17  ;;  %v184_v59 = vld [vmem:[#allocation3 + $0x2] ss:$8 sm:$0xf] }
  0x3f   :  { %v101_v28 = vrot.slane %v96_v18, %v1862_v20  ;;  %v109_v29 = vrot.slane %v96_v18, %v1864_v22  ;;  %v145_v35 = vrot.slane %v140_v19, %v1862_v20  ;;  %v153_v36 = vrot.slane %v140_v19, %v1864_v22  ;;  %v228_v60 = vld [vmem:[#allocation3 + $0x3] ss:$8 sm:$0xf] }
  0x40   :  { %v113_v32 = vrot.slane %v96_v18, %v1866_v24  ;;  %v157_v40 = vrot.slane %v140_v19, %v1866_v24  ;;  %vm178_vm2 = vcmp.lt.s32.totalorder %v1857_v16, 15  ;;  %v193_v63 = vrot.slane %v184_v59, %v1859_v17 }
  0x41   :  { %128 = vrot.lane.b32.xlu1 %v1805_v3, %s1674_s22  ;;  %126 = vrot.lane.b32.xlu0 %v1793_v1, %s1674_s22  ;;  %vm222_vm3 = vcmp.lt.s32.totalorder %v1857_v16, 1  ;;  %v237_v5 = vrot.slane %v228_v60, %v1859_v17  ;;  %vm297_vm4 = vcmp.lt.s32.totalorder %v1857_v16, 127  ;;  %vm385_vm5 = vcmp.lt.s32.totalorder %v1857_v16, 112 }
  0x42   :  { %vm341_vm6 = vcmp.lt.s32.totalorder %v1857_v16, 113  ;;  %vm429_vm7 = vcmp.lt.s32.totalorder %v1857_v16, 111 }
  0x45   :  { %132 = vrot.lane.b32.xlu1 %v1800_v2, %s1674_s22  ;;  %130 = vrot.lane.b32.xlu0 %v1788_v0, %s1674_s22 }
  0x49   :  { %172 = vrot.lane.b32.xlu1 %v1805_v3, %s1675_s25  ;;  %170 = vrot.lane.b32.xlu0 %v1793_v1, %s1675_s25 }
  0x4d   :  { %176 = vrot.lane.b32.xlu1 %v1800_v2, %s1675_s25  ;;  %174 = vrot.lane.b32.xlu0 %v1788_v0, %s1675_s25 }
  0x51   :  { %216 = vrot.lane.b32.xlu1 %v1805_v3, %s1676_s0  ;;  %214 = vrot.lane.b32.xlu0 %v1793_v1, %s1676_s0 }
  0x55   :  { %220 = vrot.lane.b32.xlu1 %v1800_v2, %s1676_s0  ;;  %218 = vrot.lane.b32.xlu0 %v1788_v0, %s1676_s0 }
  0x59   :  { %291 = vrot.lane.b32.xlu1 %v1805_v3, %s1677_s26  ;;  %289 = vrot.lane.b32.xlu0 %v1793_v1, %s1677_s26 }
  0x5d   :  { %295 = vrot.lane.b32.xlu1 %v1800_v2, %s1677_s26  ;;  %293 = vrot.lane.b32.xlu0 %v1788_v0, %s1677_s26 }
  0x61   :  { %335 = vrot.lane.b32.xlu1 %v1805_v3, %s1678_s27  ;;  %333 = vrot.lane.b32.xlu0 %v1793_v1, %s1678_s27 }
  0x65   :  { %339 = vrot.lane.b32.xlu1 %v1800_v2, %s1678_s27  ;;  %337 = vrot.lane.b32.xlu0 %v1788_v0, %s1678_s27 }
  0x69   :  { %379 = vrot.lane.b32.xlu1 %v1805_v3, %s1679_s29  ;;  %377 = vrot.lane.b32.xlu0 %v1793_v1, %s1679_s29 }
  0x6d   :  { %383 = vrot.lane.b32.xlu1 %v1800_v2, %s1679_s29  ;;  %381 = vrot.lane.b32.xlu0 %v1788_v0, %s1679_s29 }
  0x71   :  { %423 = vrot.lane.b32.xlu1 %v1805_v3, %s1681_s30  ;;  %421 = vrot.lane.b32.xlu0 %v1793_v1, %s1681_s30 }
  0x75   :  { %427 = vrot.lane.b32.xlu1 %v1800_v2, %s1681_s30  ;;  %425 = vrot.lane.b32.xlu0 %v1788_v0, %s1681_s30 }
  0x79   :  { %512 = vperm.xlu1 %1507, %v504_v6   ;;  %507 = vperm.xlu0 %1506, %v503_v7   ;;  %v189_v7 = vrot.slane %v184_v59, %v1862_v20 }
  0x7d   :  { %690 = vperm.xlu1 %1507, %v686_v8   ;;  %695 = vperm.xlu0 %1506, %v687_v9   ;;  %v197_v8 = vrot.slane %v184_v59, %v1864_v22  ;;  %v201_v9 = vrot.slane %v184_v59, %v1866_v24 }
  0x81   :  { %1135 = vperm.xlu1 %1507, %v1131_v10   ;;  %1140 = vperm.xlu0 %1506, %v1132_v11  }
  0xab   :  { %v86_v14 = vpop.permute.xlu1 %85  ;;  %v82_v15 = vpop.permute.xlu0 %81 }
  0xaf   :  { %v88_v21 = vpop.permute.xlu1 %87  ;;  %v84_v23 = vpop.permute.xlu0 %83 }
  0xb0   :  { %v94_v27 = vsel %vm91_vm0, %v82_v15, %v84_v23  ;;  %v95_v33 = vsel %vm91_vm0, %v88_v21, %v82_v15  ;;  %v93_v37 = vsel %vm91_vm0, %v84_v23, %v86_v14  ;;  %v92_v41 = vsel %vm91_vm0, %v86_v14, %v88_v21 }
  0xb1   :  { %v119_v38 = vmul.f32 %v105_v25, %v94_v27  ;;  %v118_v42 = vmul.f32 %v101_v28, %v95_v33  ;;  %v120_v46 = vmul.f32 %v109_v29, %v93_v37  ;;  %v121_v52 = vmul.f32 %v113_v32, %v92_v41 }
  0xb2   :  { %v233_v14 = vrot.slane %v228_v60, %v1862_v20  ;;  %v241_v15 = vrot.slane %v228_v60, %v1864_v22  ;;  %v245_v23 = vrot.slane %v228_v60, %v1866_v24 }
  0xb3   :  { %v129_v30 = vpop.permute.xlu1 %128  ;;  %v127_v31 = vpop.permute.xlu0 %126 }
  0xb4   :  { %v137_v34 = vsel %vm134_vm1, %v127_v31, %v129_v30 }
  0xb5   :  { %v163_v39 = vmul.f32 %v149_v26, %v137_v34 }
  0xb7   :  { %v133_v43 = vpop.permute.xlu1 %132  ;;  %v131_v44 = vpop.permute.xlu0 %130  ;;  %v1379_v45 = vpack.c.bf16 %v163_v39, %v119_v38  ;;  %v303_v39 = vld [vmem:[#allocation3 + $0x5] ss:$8 sm:$0xf] }
  0xb8   :  { %v138_v47 = vsel %vm134_vm1, %v133_v43, %v127_v31  ;;  %v135_v48 = vsel %vm134_vm1, %v131_v44, %v133_v43  ;;  %v136_v49 = vsel %vm134_vm1, %v129_v30, %v131_v44  ;;  %v259_v30 = vld [vmem:[#allocation3 + $0x4] ss:$8 sm:$0xf] }
  0xb9   :  { %v162_v50 = vmul.f32 %v145_v35, %v138_v47  ;;  %v164_v51 = vmul.f32 %v153_v36, %v136_v49  ;;  %1380 = vmatprep.subr.bf16.mxu0 %v1379_v45  ;;  %v165_v53 = vmul.f32 %v157_v40, %v135_v48  ;;  %v268_v40 = vrot.slane %v259_v30, %v1859_v17 }
  0xba   :  { %v276_v41 = vrot.slane %v259_v30, %v1866_v24  ;;  %v272_v48 = vrot.slane %v259_v30, %v1864_v22  ;;  %v308_v49 = vrot.slane %v303_v39, %v1862_v20 }
  0xbb   :  { %v173_v54 = vpop.permute.xlu1 %172  ;;  %v171_v55 = vpop.permute.xlu0 %170  ;;  %v1381_v56 = vpack.c.bf16 %v162_v50, %v118_v42  ;;  %v1395_v57 = vpack.c.bf16 %v165_v53, %v121_v52  ;;  %v1397_v58 = vpack.c.bf16 %v164_v51, %v120_v46  ;;  %v264_v42 = vrot.slane %v259_v30, %v1862_v20 }
  0xbc   :  { %v181_v6 = vsel %vm178_vm2, %v171_v55, %v173_v54  ;;  %v320_v50 = vrot.slane %v303_v39, %v1866_v24  ;;  %v312_v52 = vrot.slane %v303_v39, %v1859_v17  ;;  %v316_v53 = vrot.slane %v303_v39, %v1864_v22 }
  0xbd   :  { %1382 = vmatpush1.bf16.msra.mxu0 %v1381_v56  ;;  %1396 = vmatprep.subr.bf16.mxu1 %v1395_v57  ;;  %v207_v18 = vmul.f32 %v193_v63, %v181_v6  ;;  %v282_v56 = vmul.f32 %v268_v40, %v1805_v3  ;;  %v284_v57 = vmul.f32 %v276_v41, %v1800_v2 }
  0xbe   :  { %1398 = vmatpush1.bf16.msra.mxu1 %v1397_v58  ;;  %v281_v58 = vmul.f32 %v264_v42, %v1793_v1  ;;  %v283_v59 = vmul.f32 %v272_v48, %v1788_v0  ;;  %v435_v48 = vld [vmem:[#allocation3 + $0x20] ss:$8 sm:$0xf] }
  0xbf   :  { %v177_v61 = vpop.permute.xlu1 %176  ;;  %v175_v62 = vpop.permute.xlu0 %174 }
  0xc0   :  { %v182_v12 = vsel %vm178_vm2, %v177_v61, %v171_v55  ;;  %v180_v19 = vsel %vm178_vm2, %v173_v54, %v175_v62  ;;  %v179_v25 = vsel %vm178_vm2, %v175_v62, %v177_v61 }
  0xc1   :  { %v206_v26 = vmul.f32 %v189_v7, %v182_v12  ;;  %v208_v31 = vmul.f32 %v197_v8, %v180_v19  ;;  %v209_v35 = vmul.f32 %v201_v9, %v179_v25  ;;  %v391_v12 = vld [vmem:[#allocation3 + $0x7] ss:$8 sm:$0xf] }
  0xc2   :  { %v404_v30 = vrot.slane %v391_v12, %v1864_v22 }
  0xc3   :  { %v217_v10 = vpop.permute.xlu1 %216  ;;  %v215_v11 = vpop.permute.xlu0 %214 }
  0xc4   :  { %v225_v13 = vsel %vm222_vm3, %v215_v11, %v217_v10 }
  0xc5   :  { %v251_v21 = vmul.f32 %v237_v5, %v225_v13  ;;  %v347_v13 = vld [vmem:[#allocation3 + $0x6] ss:$8 sm:$0xf] }
  0xc7   :  { %v221_v27 = vpop.permute.xlu1 %220  ;;  %v219_v28 = vpop.permute.xlu0 %218  ;;  %v1383_v29 = vpack.c.bf16 %v251_v21, %v207_v18 }
  0xc8   :  { %v226_v32 = vsel %vm222_vm3, %v221_v27, %v215_v11  ;;  %v223_v33 = vsel %vm222_vm3, %v219_v28, %v221_v27  ;;  %v224_v34 = vsel %vm222_vm3, %v217_v10, %v219_v28  ;;  %v408_v28 = vrot.slane %v391_v12, %v1866_v24 }
  0xc9   :  { %v250_v36 = vmul.f32 %v233_v14, %v226_v32  ;;  %v252_v37 = vmul.f32 %v241_v15, %v224_v34  ;;  %v253_v38 = vmul.f32 %v245_v23, %v223_v33  ;;  %1384 = vmatprep.subr.bf16.mxu0 %v1383_v29  ;;  %v364_v14 = vrot.slane %v347_v13, %v1866_v24 }
  0xca   :  { %v356_v15 = vrot.slane %v347_v13, %v1859_v17  ;;  %v360_v23 = vrot.slane %v347_v13, %v1864_v22  ;;  %v400_v29 = vrot.slane %v391_v12, %v1859_v17 }
  0xcb   :  { %v292_v43 = vpop.permute.xlu1 %291  ;;  %v290_v44 = vpop.permute.xlu0 %289  ;;  %v1385_v45 = vpack.c.bf16 %v250_v36, %v206_v26  ;;  %v1399_v46 = vpack.c.bf16 %v253_v38, %v209_v35  ;;  %v1401_v47 = vpack.c.bf16 %v252_v37, %v208_v31  ;;  %v396_v26 = vrot.slane %v391_v12, %v1862_v20 }
  0xcc   :  { %v300_v51 = vsel %vm297_vm4, %v290_v44, %v292_v43  ;;  %v352_v31 = vrot.slane %v347_v13, %v1862_v20 }
  0xcd   :  { %1386 = vmatpush1.bf16.msra.mxu0 %v1385_v45  ;;  %1400 = vmatprep.subr.bf16.mxu1 %v1399_v46  ;;  %v325_v60 = vmul.f32 %v308_v49, %v300_v51 }
  0xce   :  { %1402 = vmatpush1.bf16.msra.mxu1 %v1401_v47 }
  0xcf   :  { %v296_v54 = vpop.permute.xlu1 %295  ;;  %v294_v55 = vpop.permute.xlu0 %293  ;;  %v1389_v10 = vpack.c.bf16 %v325_v60, %v281_v58 }
  0xd0   :  { %v301_v61 = vsel %vm297_vm4, %v296_v54, %v290_v44  ;;  %v298_v62 = vsel %vm297_vm4, %v294_v55, %v296_v54  ;;  %v299_v63 = vsel %vm297_vm4, %v292_v43, %v294_v55  ;;  %v452_v54 = vrot.slane %v435_v48, %v1866_v24 }
  0xd1   :  { %v328_v5 = vmul.f32 %v320_v50, %v301_v61  ;;  %v326_v6 = vmul.f32 %v312_v52, %v299_v63  ;;  %v327_v7 = vmul.f32 %v316_v53, %v298_v62  ;;  %v444_v55 = vrot.slane %v435_v48, %v1859_v17  ;;  %v465_v17 = vld [vmem:[%s2071_s2] sm:$0xff] }
  0xd3   :  { %v336_v3 = vpop.permute.xlu1 %335  ;;  %v334_v8 = vpop.permute.xlu0 %333  ;;  %v1387_v2 = vpack.c.bf16 %v326_v6, %v282_v56  ;;  %v1403_v9 = vpack.c.bf16 %v328_v5, %v284_v57  ;;  %v1405_v1 = vpack.c.bf16 %v327_v7, %v283_v59  ;;  %v448_v56 = vrot.slane %v435_v48, %v1864_v22 }
  0xd4   :  { %v344_v33 = vsel %vm341_vm6, %v334_v8, %v336_v3  ;;  %v440_v57 = vrot.slane %v435_v48, %v1862_v20  ;;  %v466_v20 = vld [vmem:[%s2071_s2 + $0x8] sm:$0xff] }
  0xd5   :  { %1388 = vmatprep.subr.bf16.mxu0 %v1387_v2  ;;  %1404 = vmatprep.subr.bf16.mxu1 %v1403_v9  ;;  %v369_v46 = vmul.f32 %v352_v31, %v344_v33  ;;  %v963_v31 = vld [vmem:[#allocation8 + $0x180] sm:$0xff]  ;;  %v934_v48 = vld [vmem:[#allocation8 + $0x98] sm:$0xff] }
  0xd6   :  { %1390 = vmatpush1.bf16.msra.mxu0 %v1389_v10  ;;  %1406 = vmatpush1.bf16.msra.mxu1 %v1405_v1 }
  0xd7   :  { %v340_v0 = vpop.permute.xlu1 %339  ;;  %v338_v11 = vpop.permute.xlu0 %337 }
  0xd8   :  { %v345_v21 = vsel %vm341_vm6, %v340_v0, %v334_v8  ;;  %v343_v25 = vsel %vm341_vm6, %v336_v3, %v338_v11  ;;  %v342_v32 = vsel %vm341_vm6, %v338_v11, %v340_v0 }
  0xd9   :  { %v372_v34 = vmul.f32 %v364_v14, %v345_v21  ;;  %v370_v35 = vmul.f32 %v356_v15, %v343_v25  ;;  %v371_v42 = vmul.f32 %v360_v23, %v342_v32  ;;  %v931_v25 = vld [vmem:[#allocation8 + $0x80] sm:$0xff]  ;;  %v964_v32 = vld [vmem:[#allocation8 + $0x188] sm:$0xff] }
  0xdb   :  { %v380_v18 = vpop.permute.xlu1 %379  ;;  %v378_v19 = vpop.permute.xlu0 %377 }
  0xdc   :  { %v388_v27 = vsel %vm385_vm5, %v378_v19, %v380_v18 }
  0xdd   :  { %v413_v38 = vmul.f32 %v396_v26, %v388_v27  ;;  %v932_v26 = vld [vmem:[#allocation8 + $0x88] sm:$0xff] }
  0xdf   :  { %v384_v36 = vpop.permute.xlu1 %383  ;;  %v382_v37 = vpop.permute.xlu0 %381  ;;  %v1393_v53 = vpack.c.bf16 %v413_v38, %v369_v46  ;;  %v948_v46 = vld [vmem:[#allocation8 + $0x108] sm:$0xff] }
  0xe0   :  { %v389_v39 = vsel %vm385_vm5, %v384_v36, %v378_v19  ;;  %v386_v40 = vsel %vm385_vm5, %v382_v37, %v384_v36  ;;  %v387_v41 = vsel %vm385_vm5, %v380_v18, %v382_v37 }
  0xe1   :  { %v416_v43 = vmul.f32 %v408_v28, %v389_v39  ;;  %v414_v44 = vmul.f32 %v400_v29, %v387_v41  ;;  %v415_v45 = vmul.f32 %v404_v30, %v386_v40  ;;  %v915_v39 = vld [vmem:[#allocation8] sm:$0xff] }
  0xe3   :  { %v424_v47 = vpop.permute.xlu1 %423  ;;  %v422_v49 = vpop.permute.xlu0 %421  ;;  %v1391_v50 = vpack.c.bf16 %v414_v44, %v370_v35  ;;  %v1407_v51 = vpack.c.bf16 %v416_v43, %v372_v34  ;;  %v1409_v52 = vpack.c.bf16 %v415_v45, %v371_v42  ;;  %v1419_v42 = vpack.c.bf16 %v932_v26, %v931_v25  ;;  %v916_v44 = vld [vmem:[#allocation8 + $0x8] sm:$0xff]  ;;  %v947_v45 = vld [vmem:[#allocation8 + $0x100] sm:$0xff]  ;;  %v953_v25 = vld [vmem:[#allocation8 + $0x130] sm:$0xff] }
  0xe4   :  { %v432_v58 = vsel %vm429_vm7, %v422_v49, %v424_v47  ;;  %v1451_v43 = vpack.c.bf16 %v964_v32, %v963_v31  ;;  %v954_v31 = vld [vmem:[#allocation8 + $0x138] sm:$0xff]  ;;  %v939_v32 = vld [vmem:[#allocation8 + $0xc0] sm:$0xff] }
  0xe5   :  { %1392 = vmatprep.subr.bf16.mxu0 %v1391_v50  ;;  %1408 = vmatprep.subr.bf16.mxu1 %v1407_v51  ;;  %v457_v7 = vmul.f32 %v440_v57, %v432_v58  ;;  %v966_v50 = vld [vmem:[#allocation8 + $0x198] sm:$0xff]  ;;  %v684_v51 = vld [vmem:[%s2073_s4] sm:$0xff] }
  0xe6   :  { %1394 = vmatpush1.bf16.msra.mxu0 %v1393_v53  ;;  %1410 = vmatpush1.bf16.msra.mxu1 %v1409_v52  ;;  %v1421_v52 = vpack.c.bf16 %v916_v44, %v915_v39  ;;  %v1453_v53 = vpack.c.bf16 %v948_v46, %v947_v45  ;;  %v949_v58 = vld [vmem:[#allocation8 + $0x110] sm:$0xff]  ;;  %v972_v39 = vld [vmem:[#allocation8 + $0x1c8] sm:$0xff]  ;;  %v942_v46 = vld [vmem:[#allocation8 + $0xd8] sm:$0xff] }
  0xe7   :  { %v428_v59 = vpop.permute.xlu1 %427  ;;  %v426_v60 = vpop.permute.xlu0 %425  ;;  %v956_v44 = vld [vmem:[#allocation8 + $0x148] sm:$0xff]  ;;  %v941_v45 = vld [vmem:[#allocation8 + $0xd0] sm:$0xff] }
  0xe8   :  { %v433_v61 = vsel %vm429_vm7, %v428_v59, %v422_v49  ;;  %v430_v62 = vsel %vm429_vm7, %v426_v60, %v428_v59  ;;  %v431_v63 = vsel %vm429_vm7, %v424_v47, %v426_v60  ;;  %v933_v47 = vld [vmem:[#allocation8 + $0x90] sm:$0xff]  ;;  %v950_v59 = vld [vmem:[#allocation8 + $0x118] sm:$0xff]  ;;  %v935_v60 = vld [vmem:[#allocation8 + $0xa0] sm:$0xff] }
  0xe9   :  { %v460_v16 = vmul.f32 %v452_v54, %v433_v61  ;;  %v458_v5 = vmul.f32 %v444_v55, %v431_v63  ;;  %v459_v6 = vmul.f32 %v448_v56, %v430_v62  ;;  %v965_v49 = vld [vmem:[#allocation8 + $0x190] sm:$0xff]  ;;  %v918_v55 = vld [vmem:[#allocation8 + $0x18] sm:$0xff]  ;;  %v1423_v56 = vpack.c.bf16 %v934_v48, %v933_v47  ;;  %v936_v61 = vld [vmem:[#allocation8 + $0xa8] sm:$0xff] }
  0xea   :  { %v917_v54 = vld [vmem:[#allocation8 + $0x10] sm:$0xff]  ;;  %v1455_v57 = vpack.c.bf16 %v966_v50, %v965_v49  ;;  %v967_v62 = vld [vmem:[#allocation8 + $0x1a0] sm:$0xff]  ;;  %v968_v63 = vld [vmem:[#allocation8 + $0x1a8] sm:$0xff] }
  0xeb   :  { %538 = vmatprep.subr.mxu0 %v458_v5  ;;  %615 = vmatprep.subr.mxu1 %v460_v16  ;;  %v685_v16 = vld [vmem:[%s2073_s4 + $0x8] sm:$0xff]  ;;  %v1425_v5 = vpack.c.bf16 %v918_v55, %v917_v54  ;;  %v973_v47 = vld [vmem:[#allocation8 + $0x1d0] sm:$0xff]  ;;  %s1683_s4 = smov [#allocation9]  }
  0xec   :  { %539 = vmatpush1.msra.mxu0 %v457_v7  ;;  %616 = vmatpush1.msra.mxu1 %v459_v6  ;;  %v1457_v6 = vpack.c.bf16 %v950_v59, %v949_v58  ;;  %v919_v7 = vld [vmem:[#allocation8 + $0x20] sm:$0xff]  ;;  %v974_v48 = vld [vmem:[#allocation8 + $0x1d8] sm:$0xff]  ;;  %v957_v54 = vld [vmem:[#allocation8 + $0x150] sm:$0xff]  ;;  %s1243_s26 = sshll.u32 %s1683_s4, 4  ;;  %s1244_s26 = int_to_ptr.vmem [resolvable:$true] %s1243_s26 }
  0xed   :  { %1272 = vmatmul.mubr.msk.f32.vlgmr.msra.gmra.mrb[0].mxu0 %vm515_vm8, %v465_v17  ;;  %1274 = vmatmul.mubr.msk.f32.vlgmr.msra.gmra.mrb[0].mxu1 %vm515_vm8, %v465_v17  ;;  %v920_v17 = vld [vmem:[#allocation8 + $0x28] sm:$0xff]  ;;  %v1471_v55 = vpack.c.bf16 %v974_v48, %v973_v47  ;;  %v975_v59 = vld [vmem:[#allocation8 + $0x1e0] sm:$0xff]  ;;  %s1614_s27 = scalar_lea.vmem %s1244_s26, 1024  ;;  %p1619_p11 = scmp.lt.s32.totalorder %s1244_s26, %s1244_s26 }
  0xee   :  { %592 = vmatprep.mubr.f32.mxu0 %v1680_v4  ;;  %669 = vmatprep.mubr.f32.mxu1 %v1680_v4  ;;  %v944_v58 = vld [vmem:[#allocation8 + $0xe8] sm:$0xff]  ;;  %p1615_p10 = scmp.ne.s32.totalorder %s1244_s26, %s1614_s27  ;;  %p1620_p12 = scmp.lt.s32.totalorder %s1614_s27, %s1614_s27 }
  0xf0   :  { %p1621_p13 = por %p1620_p12, %p1619_p11 }
  0xf1   :  { %1273 = vmatmul.mubr.msk.f32.gmra.mrb[2].mxu0 %vm515_vm8, %v466_v20  ;;  %1275 = vmatmul.mubr.msk.f32.gmra.mrb[2].mxu1 %vm515_vm8, %v466_v20  ;;  %v951_v20 = vld [vmem:[#allocation8 + $0x120] sm:$0xff] }
  0xf2   :  { %769 = vmatprep.mubr.f32.mxu0 %v1680_v4  ;;  %846 = vmatprep.mubr.f32.mxu1 %v1680_v4  ;;  %p1622_p0 = pnand %p1621_p13, %p1615_p10 }
  0xf8   :  { %v508_v2 = vpop.permute.xlu0 %507  ;;  %v513_v9 = vpop.permute.xlu1 %512 }
 0x1c0   :  { %v588_v22 = vpop.f32.mrb[0].mxu0  ;;  %v665_v24 = vpop.f32.mrb[0].mxu1 }
 0x1c1   :  { %v667_v3 = vpop.f32.mrb[1].mxu1  ;;  %v590_v8 = vpop.f32.mrb[1].mxu0  ;;  %v1973_v1 = vadd.f32 %v588_v22, %v508_v2  ;;  %v1975_v10 = vadd.f32 %v665_v24, %v508_v2  ;;  %v1427_v22 = vpack.c.bf16 %v936_v61, %v935_v60  ;;  %v1459_v24 = vpack.c.bf16 %v968_v63, %v967_v62  ;;  %v976_v60 = vld [vmem:[#allocation8 + $0x1e8] sm:$0xff] }
 0x1c2   :  { %v1977_v0 = vadd.f32 %v667_v3, %v508_v2  ;;  %v1979_v11 = vadd.f32 %v590_v8, %v508_v2  ;;  %v952_v3 = vld [vmem:[#allocation8 + $0x128] sm:$0xff]  ;;  %v937_v8 = vld [vmem:[#allocation8 + $0xb0] sm:$0xff]  ;;  %v938_v2 = vld [vmem:[#allocation8 + $0xb8] sm:$0xff] }
 0x1c3   :  { %v676_v27 = vmax.f32 %v1973_v1, 0.0  ;;  %v678_v28 = vmax.f32 %v1975_v10, 0.0  ;;  %v691_v1 = vpop.permute.xlu1 %690 }
 0x1c4   :  { %v594_v12 = vpop.f32.mrb[2].mxu0  ;;  %v671_v13 = vpop.f32.mrb[2].mxu1  ;;  %v679_v33 = vmax.f32 %v1977_v0, 0.0  ;;  %v677_v34 = vmax.f32 %v1979_v11, 0.0  ;;  %v970_v11 = vld [vmem:[#allocation8 + $0x1b8] sm:$0xff] }
 0x1c5   :  { %v1981_v14 = vadd.f32 %v594_v12, %v513_v9  ;;  %v1983_v15 = vadd.f32 %v671_v13, %v513_v9  ;;  %v673_v18 = vpop.f32.mrb[3].mxu1  ;;  %v596_v19 = vpop.f32.mrb[3].mxu0  ;;  %v1461_v12 = vpack.c.bf16 %v952_v3, %v951_v20  ;;  %v1431_v13 = vpack.c.bf16 %v938_v2, %v937_v8  ;;  %v945_v20 = vld [vmem:[#allocation8 + $0xf0] sm:$0xff]  ;;  %v978_v3 = vld [vmem:[#allocation8 + $0x1f8] sm:$0xff] }
 0x1c6   :  { %v1985_v21 = vadd.f32 %v673_v18, %v513_v9  ;;  %v1987_v23 = vadd.f32 %v596_v19, %v513_v9  ;;  %v969_v9 = vld [vmem:[#allocation8 + $0x1b0] sm:$0xff]  ;;  %v922_v19 = vld [vmem:[#allocation8 + $0x38] sm:$0xff] }
 0x1c7   :  { %v680_v29 = vmax.f32 %v1981_v14, 0.0  ;;  %v682_v30 = vmax.f32 %v1983_v15, 0.0  ;;  %v921_v18 = vld [vmem:[#allocation8 + $0x30] sm:$0xff]  ;;  %v1463_v26 = vpack.c.bf16 %v970_v11, %v969_v9 }
 0x1c8   :  { %v683_v35 = vmax.f32 %v1985_v21, 0.0  ;;  %v681_v36 = vmax.f32 %v1987_v23, 0.0  ;;  %v929_v11 = vld [vmem:[#allocation8 + $0x70] sm:$0xff]  ;;  %v696_v21 = vpop.permute.xlu0 %695 }
 0x1c9   :  { %v1413_v37 = vpack.c.bf16 %v680_v29, %v676_v27  ;;  %v1417_v38 = vpack.c.bf16 %v682_v30, %v678_v28 }
 0x1ca   :  { %v1415_v40 = vpack.c.bf16 %v683_v35, %v679_v33  ;;  %v1411_v41 = vpack.c.bf16 %v681_v36, %v677_v34 }
 0x1cc   :  { %1412 = vmatprep.subr.bf16.mxu0 %v1411_v41  ;;  %1416 = vmatprep.subr.bf16.mxu1 %v1415_v40  ;;  %v1465_v40 = vpack.c.bf16 %v954_v31, %v953_v25  ;;  %v924_v41 = vld [vmem:[#allocation8 + $0x48] sm:$0xff] }
 0x1cd   :  { %1414 = vmatpush1.bf16.msra.mxu0 %v1413_v37  ;;  %1418 = vmatpush1.bf16.msra.mxu1 %v1417_v38  ;;  %v940_v37 = vld [vmem:[#allocation8 + $0xc8] sm:$0xff]  ;;  %v971_v38 = vld [vmem:[#allocation8 + $0x1c0] sm:$0xff] }
 0x1ce   :  { %1420 = vmatprep.subr.bf16.mxu0 %v1419_v42  ;;  %1452 = vmatprep.subr.bf16.mxu1 %v1451_v43  ;;  %v1435_v0 = vpack.c.bf16 %v940_v37, %v939_v32  ;;  %v955_v42 = vld [vmem:[#allocation8 + $0x140] sm:$0xff]  ;;  %v1467_v43 = vpack.c.bf16 %v972_v39, %v971_v38 }
 0x1cf   :  { %v1469_v50 = vpack.c.bf16 %v956_v44, %v955_v42 }
 0x1d0   :  { %1276 = vmatmul.mubr.msk.f32.vlgmr.msra.gmra.mrb[4].mxu0 %vm698_vm9, %v684_v51  ;;  %1278 = vmatmul.mubr.msk.f32.vlgmr.msra.gmra.mrb[4].mxu1 %vm698_vm9, %v684_v51  ;;  %v1439_v51 = vpack.c.bf16 %v942_v46, %v941_v45 }
 0x1d1   :  { %1422 = vmatpush3.bf16.msra.mxu0 %v1421_v52  ;;  %1454 = vmatpush3.bf16.msra.mxu1 %v1453_v53  ;;  %v925_v52 = vld [vmem:[#allocation8 + $0x50] sm:$0xff]  ;;  %v926_v53 = vld [vmem:[#allocation8 + $0x58] sm:$0xff] }
 0x1d2   :  { %775 = vmatprep.mubr.f32.mxu0 %v1680_v4  ;;  %852 = vmatprep.mubr.f32.mxu1 %v1680_v4  ;;  %v1429_v4 = vpack.c.bf16 %v920_v17, %v919_v7  ;;  %v1441_v61 = vpack.c.bf16 %v926_v53, %v925_v52  ;;  %v1475_v7 = vpack.c.bf16 %v976_v60, %v975_v59  ;;  %v960_v17 = vld [vmem:[#allocation8 + $0x168] sm:$0xff] }
 0x1d3   :  { %1424 = vmatprep.subr.bf16.mxu0 %v1423_v56  ;;  %1456 = vmatprep.subr.bf16.mxu1 %v1455_v57  ;;  %v958_v56 = vld [vmem:[#allocation8 + $0x158] sm:$0xff]  ;;  %v943_v57 = vld [vmem:[#allocation8 + $0xe0] sm:$0xff] }
 0x1d4   :  { %1277 = vmatmul.mubr.msk.f32.gmra.mrb[6].mxu0 %vm698_vm9, %v685_v16  ;;  %1279 = vmatmul.mubr.msk.f32.gmra.mrb[6].mxu1 %vm698_vm9, %v685_v16  ;;  %v1473_v62 = vpack.c.bf16 %v958_v56, %v957_v54  ;;  %v1443_v63 = vpack.c.bf16 %v944_v58, %v943_v57  ;;  %v927_v16 = vld [vmem:[#allocation8 + $0x60] sm:$0xff] }
 0x1d5   :  { %1426 = vmatpush3.bf16.msra.mxu0 %v1425_v5  ;;  %1043 = vmatprep.mubr.f32.mxu0 %v677_v34  ;;  %v1433_v34 = vpack.c.bf16 %v922_v19, %v921_v18  ;;  %v928_v5 = vld [vmem:[#allocation8 + $0x68] sm:$0xff]  ;;  %v962_v18 = vld [vmem:[#allocation8 + $0x178] sm:$0xff] }
 0x1d6   :  { %1458 = vmatpush3.bf16.msra.mxu1 %v1457_v6  ;;  %1118 = vmatprep.mubr.f32.mxu1 %v679_v33  ;;  %v923_v33 = vld [vmem:[#allocation8 + $0x40] sm:$0xff]  ;;  %v1445_v8 = vpack.c.bf16 %v928_v5, %v927_v16 }
 0x1d7   :  { %1428 = vmatprep.subr.bf16.mxu0 %v1427_v22  ;;  %1460 = vmatprep.subr.bf16.mxu1 %v1459_v24  ;;  %v1437_v49 = vpack.c.bf16 %v924_v41, %v923_v33  ;;  %v959_v6 = vld [vmem:[#allocation8 + $0x160] sm:$0xff]  ;;  %v946_v22 = vld [vmem:[#allocation8 + $0xf8] sm:$0xff]  ;;  %v977_v24 = vld [vmem:[#allocation8 + $0x1f0] sm:$0xff] }
 0x1d8   :  { %v1477_v2 = vpack.c.bf16 %v960_v17, %v959_v6  ;;  %v1447_v9 = vpack.c.bf16 %v946_v22, %v945_v20 }
 0x1d9   :  { %1430 = vmatpush3.bf16.msra.mxu0 %v1429_v4  ;;  %v930_v4 = vld [vmem:[#allocation8 + $0x78] sm:$0xff] }
 0x1da   :  { %1462 = vmatpush3.bf16.msra.mxu1 %v1461_v12  ;;  %1432 = vmatprep.subr.bf16.mxu0 %v1431_v13  ;;  %v1479_v12 = vpack.c.bf16 %v978_v3, %v977_v24  ;;  %v961_v13 = vld [vmem:[#allocation8 + $0x170] sm:$0xff]  ;;  %v1449_v19 = vpack.c.bf16 %v930_v4, %v929_v11 }
 0x1db   :  { %1464 = vmatprep.subr.bf16.mxu1 %v1463_v26  ;;  %v1481_v25 = vpack.c.bf16 %v962_v18, %v961_v13  ;;  %v1129_v26 = vld [vmem:[#allocation6] sm:$0xff] }
 0x1dd   :  { %1434 = vmatpush3.bf16.msra.mxu0 %v1433_v34 }
 0x1de   :  { %1466 = vmatpush3.bf16.msra.mxu1 %v1465_v40  ;;  %1436 = vmatprep.subr.bf16.mxu0 %v1435_v0 }
 0x1df   :  { %1468 = vmatprep.subr.bf16.mxu1 %v1467_v43 }
 0x1e1   :  { %1438 = vmatpush3.bf16.msra.mxu0 %v1437_v49 }
 0x1e2   :  { %1470 = vmatpush3.bf16.msra.mxu1 %v1469_v50  ;;  %1440 = vmatprep.subr.bf16.mxu0 %v1439_v51 }
 0x1e3   :  { %1472 = vmatprep.subr.bf16.mxu1 %v1471_v55 }
 0x1e5   :  { %1442 = vmatpush3.bf16.msra.mxu0 %v1441_v61 }
 0x1e6   :  { %1474 = vmatpush3.bf16.msra.mxu1 %v1473_v62  ;;  %1444 = vmatprep.subr.bf16.mxu0 %v1443_v63 }
 0x1e7   :  { %1476 = vmatprep.subr.bf16.mxu1 %v1475_v7 }
 0x1e9   :  { %1446 = vmatpush3.bf16.msra.mxu0 %v1445_v8 }
 0x1ea   :  { %1478 = vmatpush3.bf16.msra.mxu1 %v1477_v2  ;;  %1448 = vmatprep.subr.bf16.mxu0 %v1447_v9 }
 0x1eb   :  { %1480 = vmatprep.subr.bf16.mxu1 %v1479_v12 }
 0x1ed   :  { %1450 = vmatpush3.bf16.msra.mxu0 %v1449_v19 }
 0x1ee   :  { %1482 = vmatpush3.bf16.msra.mxu1 %v1481_v25 }
 0x1f0   :  { %1044 = vmatmul.mubr.f32.vlgmr.msra.gmra.mrb[8].mxu0 %v676_v27 }
 0x1f1   :  { %1119 = vmatmul.mubr.f32.vlgmr.msra.gmra.mrb[8].mxu1 %v678_v28  ;;  %1048 = vmatprep.mubr.f32.mxu0 %v681_v36 }
 0x1f2   :  { %1123 = vmatprep.mubr.f32.mxu1 %v683_v35 }
 0x1f4   :  { %1049 = vmatmul.mubr.f32.gmra.mrb[10].mxu0 %v680_v29 }
 0x1f5   :  { %1124 = vmatmul.mubr.f32.gmra.mrb[10].mxu1 %v682_v30  ;;  %1376 = vmatprep.mubr.msk.f32.mxu0 %vm698_vm9, %v1129_v26 }
 0x2a3   :  { %v771_v27 = vpop.f32.mrb[4].mxu0  ;;  %v848_v31 = vpop.f32.mrb[4].mxu1 }
 0x2a4   :  { %v772_v10 = vadd.f32 %v771_v27, %v691_v1  ;;  %v849_v28 = vadd.f32 %v848_v31, %v691_v1  ;;  %v773_v32 = vpop.f32.mrb[5].mxu0  ;;  %v850_v23 = vpop.f32.mrb[5].mxu1  ;;  %v1130_v27 = vld [vmem:[#allocation6 + $0x8] sm:$0xff] }
 0x2a5   :  { %v774_v36 = vadd.f32 %v773_v32, %v691_v1  ;;  %v851_v37 = vadd.f32 %v850_v23, %v691_v1 }
 0x2a6   :  { %v1280_v35 = vmul.f32 -1.442695, %v772_v10  ;;  %v1282_v38 = vmul.f32 -1.442695, %v849_v28 }
 0x2a7   :  { %v1281_v14 = vmul.f32 -1.442695, %v774_v36  ;;  %v1283_v29 = vmul.f32 -1.442695, %v851_v37  ;;  %v777_v39 = vpop.f32.mrb[6].mxu0  ;;  %v854_v15 = vpop.f32.mrb[6].mxu1 }
 0x2a8   :  { %1508 = vpow2.f32 %v1280_v35  ;;  %v778_v30 = vadd.f32 %v777_v39, %v696_v21  ;;  %v855_v34 = vadd.f32 %v854_v15, %v696_v21  ;;  %v779_v40 = vpop.f32.mrb[7].mxu0  ;;  %v856_v0 = vpop.f32.mrb[7].mxu1 }
 0x2a9   :  { %1510 = vpow2.f32 %v1282_v38  ;;  %v780_v33 = vadd.f32 %v779_v40, %v696_v21  ;;  %v857_v41 = vadd.f32 %v856_v0, %v696_v21 }
 0x2aa   :  { %1512 = vpow2.f32 %v1281_v14  ;;  %v1284_v42 = vmul.f32 -1.442695, %v778_v30  ;;  %v1286_v43 = vmul.f32 -1.442695, %v855_v34 }
 0x2ab   :  { %1514 = vpow2.f32 %v1283_v29  ;;  %v1285_v44 = vmul.f32 -1.442695, %v780_v33  ;;  %v1287_v45 = vmul.f32 -1.442695, %v857_v41 }
 0x2ac   :  { %1516 = vpow2.f32 %v1284_v42 }
 0x2ad   :  { %1518 = vpow2.f32 %v1286_v43 }
 0x2ae   :  { %1520 = vpow2.f32 %v1285_v44 }
 0x2af   :  { %1522 = vpow2.f32 %v1287_v45 }
 0x2b2   :  { %v1509_v46 = vpop.eup %1508 }
 0x2b3   :  { %v1511_v47 = vpop.eup %1510  ;;  %v883_v48 = vadd.f32 1.0, %v1509_v46 }
 0x2b4   :  { %v1513_v49 = vpop.eup %1512  ;;  %v885_v50 = vadd.f32 1.0, %v1511_v47 }
 0x2b5   :  { %v1515_v51 = vpop.eup %1514  ;;  %1524 = vrcp.f32 %v883_v48  ;;  %v884_v52 = vadd.f32 1.0, %v1513_v49 }
 0x2b6   :  { %v1517_v53 = vpop.eup %1516  ;;  %1526 = vrcp.f32 %v885_v50  ;;  %v886_v54 = vadd.f32 1.0, %v1515_v51 }
 0x2b7   :  { %v1519_v55 = vpop.eup %1518  ;;  %1528 = vrcp.f32 %v884_v52  ;;  %v887_v56 = vadd.f32 1.0, %v1517_v53 }
 0x2b8   :  { %v1521_v57 = vpop.eup %1520  ;;  %1530 = vrcp.f32 %v886_v54  ;;  %v889_v58 = vadd.f32 1.0, %v1519_v55 }
 0x2b9   :  { %v1523_v59 = vpop.eup %1522  ;;  %1532 = vrcp.f32 %v887_v56  ;;  %v888_v60 = vadd.f32 1.0, %v1521_v57 }
 0x2ba   :  { %1534 = vrcp.f32 %v889_v58  ;;  %v890_v61 = vadd.f32 1.0, %v1523_v59 }
 0x2bb   :  { %1536 = vrcp.f32 %v888_v60 }
 0x2bc   :  { %1538 = vrcp.f32 %v890_v61 }
 0x2bf   :  { %v1525_v62 = vpop.eup %1524 }
 0x2c0   :  { %v1527_v63 = vpop.eup %1526  ;;  %907 = vst [vmem:[#allocation9] sm:$0xff] %v1525_v62 }
 0x2c1   :  { %v1529_v16 = vpop.eup %1528  ;;  %909 = vst [vmem:[#allocation9 + $0x10] sm:$0xff] %v1527_v63 }
 0x2c2   :  { %v1531_v5 = vpop.eup %1530  ;;  %908 = vst [vmem:[#allocation9 + $0x8] sm:$0xff] %v1529_v16 }
 0x2c3   :  { %v1533_v6 = vpop.eup %1532  ;;  %910 = vst [vmem:[#allocation9 + $0x18] sm:$0xff] %v1531_v5  ;;  %v1324_v7 = vpop.f32.mrb[8].mxu0 }
 0x2c4   :  { %v1535_v17 = vpop.eup %1534  ;;  %911 = vst [vmem:[#allocation9 + $0x20] sm:$0xff] %v1533_v6  ;;  %v1362_v20 = vpop.f32.mrb[8].mxu1 }
 0x2c5   :  { %v1325_v22 = vpop.f32.mrb[9].mxu0  ;;  %v1537_v24 = vpop.eup %1536  ;;  %913 = vst [vmem:[#allocation9 + $0x30] sm:$0xff] %v1535_v17 }
 0x2c6   :  { %v1326_v3 = vadd.f32 %v1325_v22, %v1324_v7  ;;  %v1363_v8 = vpop.f32.mrb[9].mxu1  ;;  %v1539_v2 = vpop.eup %1538  ;;  %912 = vst [vmem:[#allocation9 + $0x28] sm:$0xff] %v1537_v24 }
 0x2c7   :  { %v1364_v9 = vadd.f32 %v1363_v8, %v1362_v20  ;;  %914 = vst [vmem:[#allocation9 + $0x38] sm:$0xff] %v1539_v2  ;;  %v1327_v11 = vpop.f32.mrb[10].mxu0 }
 0x2c8   :  { %v1365_v12 = vpop.f32.mrb[10].mxu1  ;;  %v1328_v13 = vpop.f32.mrb[11].mxu0 }
 0x2c9   :  { %v1121_v4 = vadd.f32 %v1364_v9, %v1326_v3  ;;  %v1329_v18 = vadd.f32 %v1328_v13, %v1327_v11  ;;  %v1366_v19 = vpop.f32.mrb[11].mxu1 }
 0x2ca   :  { %v1367_v25 = vadd.f32 %v1366_v19, %v1365_v12 }
 0x2cc   :  { %v1126_v26 = vadd.f32 %v1367_v25, %v1329_v18 }
 0x2ce   :  { %v1483_v1 = vpack.c.bf16 %v1126_v26, %v1121_v4 }
 0x2d0   :  { %1484 = vmatprep.subr.bf16.mxu0 %v1483_v1 }
 0x2d1   :  { %1486 = vmatpush3.bf16.msra.mxu0 %v1483_v1 }
 0x2d4   :  { %1377 = vmatmul.mubr.msk.f32.vlgmr.msra.gmra.mrb[12].mxu0 %vm698_vm9, %v1130_v27 }
 0x2d5   :  { %1625 = shalt.err (!%p1622_p0)
}
 0x2d6   :  { %s1626_s11 = scalar_lea.hbm %s2078_s9, 1024 }
 0x2d7   :  { %p1627_p1 = scmp.ne.s32.totalorder %s2078_s9, %s1626_s11  ;;  %p1630_p2 = scmp.lt.u32.totalorder %s1626_s11, %s2078_s9 }
 0x2d9   :  { %p1632_p3 = pnand %p1630_p2, %p1627_p1 }
 0x2db   :  { %1635 = shalt.err (!%p1632_p3)
}
 0x2dc   :  { %1249 = dma.vmem_to_hbm [thread:$0]  %s1244_s26, 1024, %s2078_s9, [#allocation5], %s1670_s6, %s1670_s6, %s1671_s14   ;;  %v1141_v31 = vpop.permute.xlu0 %1140  ;;  %v1136_v28 = vpop.permute.xlu1 %1135 }
 0x2dd   :  { %s1684_s17 = smov [#allocation10]  }
 0x2de   :  { %s1255_s18 = sshll.u32 %s1684_s17, 4  ;;  %s1256_s18 = int_to_ptr.vmem [resolvable:$true] %s1255_s18 }
 0x2df   :  { %s1636_s9 = scalar_lea.vmem %s1256_s18, 256  ;;  %p1641_p5 = scmp.lt.s32.totalorder %s1256_s18, %s1256_s18 }
 0x2e0   :  { %p1637_p4 = scmp.ne.s32.totalorder %s1256_s18, %s1636_s9  ;;  %p1642_p6 = scmp.lt.s32.totalorder %s1636_s9, %s1636_s9 }
 0x2e2   :  { %p1643_p7 = por %p1642_p6, %p1641_p5 }
 0x2e4   :  { %p1644_p8 = pnand %p1643_p7, %p1637_p4 }
 0x3a7   :  { %v1378_v10 = vpop.f32.mrb[12].mxu0 }
 0x3a8   :  { %v1221_v32 = vadd.f32 %v1378_v10, %v1141_v31  ;;  %v1215_v23 = vpop.f32.mrb[13].mxu0 }
 0x3a9   :  { %v1216_v36 = vadd.f32 %v1215_v23, %v1136_v28 }
 0x3aa   :  { %v1291_v37 = vmul.f32 -1.442695, %v1221_v32 }
 0x3ab   :  { %v1290_v21 = vmul.f32 -1.442695, %v1216_v36 }
 0x3ac   :  { %1540 = vpow2.f32 %v1291_v37 }
 0x3ad   :  { %1542 = vpow2.f32 %v1290_v21 }
 0x3b6   :  { %v1541_v35 = vpop.eup %1540 }
 0x3b7   :  { %v1543_v38 = vpop.eup %1542  ;;  %v1231_v14 = vadd.f32 1.0, %v1541_v35 }
 0x3b8   :  { %v1230_v29 = vadd.f32 1.0, %v1543_v38 }
 0x3b9   :  { %1544 = vrcp.f32 %v1231_v14 }
 0x3ba   :  { %1546 = vrcp.f32 %v1230_v29 }
 0x3c3   :  { %v1545_v39 = vpop.eup %1544 }
 0x3c4   :  { %v1547_v15 = vpop.eup %1546  ;;  %1237 = vst [vmem:[#allocation10 + $0x8] sm:$0xff] %v1545_v39 }
 0x3c5   :  { %1236 = vst [vmem:[#allocation10] sm:$0xff] %v1547_v15 }
 0x3c6   :  { %1647 = shalt.err (!%p1644_p8)
}
 0x3c7   :  { %s1648_s8 = scalar_lea.hbm %s2079_s10, 256 }
 0x3c8   :  { %p1649_p9 = scmp.ne.s32.totalorder %s2079_s10, %s1648_s8  ;;  %p1652_p10 = scmp.lt.u32.totalorder %s1648_s8, %s2079_s10 }
 0x3ca   :  { %p1654_p11 = pnand %p1652_p10, %p1649_p9 }
 0x3cc   :  { %1657 = shalt.err (!%p1654_p11)
}
 0x3cd   :  { %1261 = dma.vmem_to_hbm [thread:$0]  %s1256_s18, 256, %s2079_s10, [#allocation11], %s1667_s23, %s1667_s23, %s1668_s24  }
 0x3ce   :  { %1662 = dma.done.wait [#allocation5], 1024  }
 0x3cf   :  { %1663 = vsyncadd [#allocation5], 4294966272 }
 0x3d0   :  { %1664 = dma.done.wait [#allocation11], 256  }
 0x3d1   :  { %1665 = vsyncadd [#allocation11], 4294967040 }
 0x3d2   :  { %1268 = vsyncpa [#allocation4], 1 }
 0x3d3   :  { %1269 = vsyncpa [#allocation7], 1 }
 0x3d4   :  { %1270 = vsyncpa [#allocation5], 1 }
 0x3d5   :  { %1271 = vsyncpa [#allocation11], 1 }

</bundles_post_ra>
